<compile_context>
chip_gen: v7x
topology: tpu7x:2x2x1
jax: 0.10.0
libtpu: 0.0.40
codegen_flags: <defaults>
</compile_context>

<pallas_src>
import functools
import math

import jax
import jax.numpy as jnp
from jax.experimental import pallas as pl
from jax.experimental.pallas import tpu as pltpu

D_K = 8       # Config.d_k
N_HEAD = 4    # Config.n_head


def _attn_weights_kernel(q_ref, k_ref, attn_ref, *, scale):
    """One (n, q-tile) grid step: scaled scores + stable softmax over keys.

    q_ref: (1, tq, d_k), k_ref: (1, Sk, d_k), attn_ref: (1, tq, Sk).
    """
    # Fold the softmax temperature into the Q tile (tq*d_k elements) rather than
    # the (tq, Sk) score matrix.
    q = q_ref[0] * scale                 # stays in the input dtype (bf16 fast path)
    k = k_ref[0]
    # MXU contraction with f32 accumulation; softmax math entirely in f32.
    s = jnp.dot(q, k.T, preferred_element_type=jnp.float32)     # (tq, Sk)
    s = s - jnp.max(s, axis=-1, keepdims=True)                  # stable softmax
    e = jnp.exp(s)
    denom = jnp.sum(e, axis=-1, keepdims=True)
    # Exact divide: rows sum to 1 (approx reciprocal was the previous failure).
    attn_ref[0] = (e / denom).astype(attn_ref.dtype)


def _pick_q_tile(s_q):
    """Largest query tile (multiple of 8, capped at 512) that divides S_q."""
    for t in (512, 256, 128, 64, 32, 16, 8):
        if s_q % t == 0:
            return t
    return s_q  # tiny / odd seq lengths: whole extent (full-dim block is legal)


def calculate_attention_weights(Q, K, *, d_k=None):
    """softmax(Q @ K^T / sqrt(d_k), axis=-1). Q: (..., Sq, d_k), K: (..., Sk, d_k)."""
    *lead, s_q, dk = Q.shape
    s_k = K.shape[-2]
    assert K.shape[-1] == dk, "Q/K feature dims must match"
    if d_k is None:
        d_k = dk  # Config.d_k == feature dim in the reference model
    n = math.prod(lead) if lead else 1

    # Fold batch and heads into one leading axis (free XLA layout plumbing).
    # No dtype cast: bf16 inputs keep the bf16 MXU path and half the DMA bytes.
    q3 = Q.reshape(n, s_q, dk)
    k3 = K.reshape(n, s_k, dk)

    tq = _pick_q_tile(s_q)
    grid = (n, s_q // tq)

    attn = pl.pallas_call(
        functools.partial(_attn_weights_kernel, scale=1.0 / math.sqrt(d_k)),
        grid=grid,
        in_specs=[
            pl.BlockSpec((1, tq, dk), lambda b, i: (b, i, 0)),
            pl.BlockSpec((1, s_k, dk), lambda b, i: (b, 0, 0)),
        ],
        out_specs=pl.BlockSpec((1, tq, s_k), lambda b, i: (b, i, 0)),
        out_shape=jax.ShapeDtypeStruct((n, s_q, s_k), Q.dtype),
        compiler_params=pltpu.CompilerParams(
            dimension_semantics=("parallel", "parallel")),
    )(q3, k3)

    # TODO(synk): at production seq lengths, fuse the @V matmul flash-style so the
    # O(S^2) attention weights are never written back to HBM (writeback-bound).
    return attn.reshape(*lead, s_q, s_k)


# ---------------- Pure-JAX reference (mirrors the PyTorch forward) ----------------
def calculate_attention_weights_ref(Q, K, *, d_k=None):
    if d_k is None:
        d_k = Q.shape[-1]
    scores = jnp.einsum("...qd,...kd->...qk", Q, K) / math.sqrt(d_k)
    return jax.nn.softmax(scores, axis=-1)


if __name__ == "__main__":
    key = jax.random.PRNGKey(0)
    kq, kk = jax.random.split(key)

    B, H, S = 2, N_HEAD, 8
    Q = jax.random.normal(kq, (B, H, S, D_K), dtype=jnp.float32)
    K = jax.random.normal(kk, (B, H, S, D_K), dtype=jnp.float32)

    attn = jax.block_until_ready(calculate_attention_weights(Q, K))
    ref = calculate_attention_weights_ref(Q, K)

    if attn.shape != (B, H, S, S):
        raise AssertionError(f"bad output shape {attn.shape}")
    if not jnp.allclose(attn, ref, rtol=2e-3, atol=2e-3):
        raise AssertionError("attention weights mismatch vs reference")
    if not jnp.allclose(jnp.sum(attn, axis=-1), 1.0, atol=2e-3):
        raise AssertionError("softmax rows do not sum to 1")

    print("KERNEL_OK")
</pallas_src>

<mosaic_0001>
module attributes {stable_mosaic.version = 11 : i64} {
  func.func @_attn_weights_kernel(%arg0: i32, %arg1: i32, %arg2: memref<1x8x8xf32, #tpu.memory_space<vmem>>, %arg3: memref<1x8x8xf32, #tpu.memory_space<vmem>>, %arg4: memref<1x8x8xf32, #tpu.memory_space<vmem>>) attributes {dimension_semantics = [#tpu.dimension_semantics<parallel>, #tpu.dimension_semantics<parallel>], iteration_bounds = array<i64: 8, 1>, scalar_prefetch = 0 : i64, scratch_operands = 0 : i64, tpu.core_type = #tpu.core_type<tc>, window_params = [{transform_indices = @transform_0, window_bounds = array<i64: 1, 8, 8>}, {transform_indices = @transform_1, window_bounds = array<i64: 1, 8, 8>}, {transform_indices = @transform_2, window_bounds = array<i64: 1, 8, 8>}]} {
    %c0 = arith.constant 0 : index
    %c0_0 = arith.constant 0 : index
    %c0_1 = arith.constant 0 : index
    %0 = vector.load %arg2[%c0, %c0_0, %c0_1] : memref<1x8x8xf32, #tpu.memory_space<vmem>>, vector<1x8x8xf32>
    %1 = vector.shape_cast %0 : vector<1x8x8xf32> to vector<8x8xf32>
    %cst = arith.constant 0.353553385 : f32
    %2 = vector.broadcast %cst : f32 to vector<8x8xf32>
    %3 = arith.mulf %1, %2 : vector<8x8xf32>
    %c0_2 = arith.constant 0 : index
    %c0_3 = arith.constant 0 : index
    %c0_4 = arith.constant 0 : index
    %4 = vector.load %arg3[%c0_2, %c0_3, %c0_4] : memref<1x8x8xf32, #tpu.memory_space<vmem>>, vector<1x8x8xf32>
    %5 = vector.shape_cast %4 : vector<1x8x8xf32> to vector<8x8xf32>
    %6 = tpu.transpose %5, [1, 0] : vector<8x8xf32> -> vector<8x8xf32>
    %cst_5 = arith.constant dense<0.000000e+00> : vector<8x8xf32>
    %7 = tpu.matmul %3, %6, %cst_5 {dimension_numbers = #tpu.dot_dimension_numbers<[1], [0], [0], [1], [0, 0, 1, 1], [], []>} : vector<8x8xf32>, vector<8x8xf32>, vector<8x8xf32> -> vector<8x8xf32>
    %cst_6 = arith.constant dense<0xFF800000> : vector<8xf32>
    %8 = vector.multi_reduction <maximumf>, %7, %cst_6 [1] : vector<8x8xf32> to vector<8xf32>
    %9 = vector.shape_cast %8 : vector<8xf32> to vector<8x1xf32>
    %10 = vector.broadcast %9 : vector<8x1xf32> to vector<8x8xf32>
    %11 = arith.subf %7, %10 : vector<8x8xf32>
    %12 = math.exp %11 : vector<8x8xf32>
    %cst_7 = arith.constant dense<0.000000e+00> : vector<8xf32>
    %13 = vector.multi_reduction <add>, %12, %cst_7 [1] : vector<8x8xf32> to vector<8xf32>
    %14 = vector.shape_cast %13 : vector<8xf32> to vector<8x1xf32>
    %15 = vector.broadcast %14 : vector<8x1xf32> to vector<8x8xf32>
    %16 = arith.divf %12, %15 : vector<8x8xf32>
    %c0_8 = arith.constant 0 : index
    %c0_9 = arith.constant 0 : index
    %c0_10 = arith.constant 0 : index
    %17 = vector.load %arg4[%c0_8, %c0_9, %c0_10] : memref<1x8x8xf32, #tpu.memory_space<vmem>>, vector<1x8x8xf32>
    %18 = vector.shape_cast %17 : vector<1x8x8xf32> to vector<8x8xf32>
    %19 = vector.shape_cast %16 : vector<8x8xf32> to vector<1x8x8xf32>
    tpu.vector_store %arg4[%c0_8, %c0_9, %c0_10], %19 {strides = array<i32>} : memref<1x8x8xf32, #tpu.memory_space<vmem>>, vector<1x8x8xf32>,
    return
  }
  func.func @transform_0(%arg0: i32, %arg1: i32) -> (i32, i32, i32) {
    %c0_i32 = arith.constant 0 : i32
    %c0_i32_0 = arith.constant 0 : i32
    return %arg0, %arg1, %c0_i32 : i32, i32, i32
  }
  func.func @transform_1(%arg0: i32, %arg1: i32) -> (i32, i32, i32) {
    %c0_i32 = arith.constant 0 : i32
    %c0_i32_0 = arith.constant 0 : i32
    %c0_i32_1 = arith.constant 0 : i32
    return %arg0, %c0_i32, %c0_i32_0 : i32, i32, i32
  }
  func.func @transform_2(%arg0: i32, %arg1: i32) -> (i32, i32, i32) {
    %c0_i32 = arith.constant 0 : i32
    %c0_i32_0 = arith.constant 0 : i32
    return %arg0, %arg1, %c0_i32 : i32, i32, i32
  }
}

</mosaic_0001>

<bundles_post_ra>
// kernel: tpu_custom_call.1
= control target key start
LH: loop header
LB: loop body
LE: loop exit
PB: predicated region body
PF: predicated region fallthrough
CT: control target
= control target key end

     0   :  { %7 = vsyncpa [#allocation3], 0  ;;  %s917_s0 = inlined_call_operand.hbm [shape: f32[8,8,8], index: 0, kind: input, shape index: {}]   ;;  %s918_s1 = inlined_call_operand.hbm [shape: f32[8,8,8], index: 1, kind: input, shape index: {}]   ;;  %s919_s2 = inlined_call_operand.hbm [shape: f32[8,8,8], index: 2, kind: output, shape index: {}]  }
   0x1   :  { %9 = vsyncpa [#allocation3 + $0x1], 0 }
   0x2   :  { %10 = vsyncpa [#allocation6], 0 }
   0x3   :  { %12 = vsyncpa [#allocation6 + $0x1], 0 }
   0x4   :  { %13 = vsyncpa [#allocation4], 0 }
   0x5   :  { %15 = vsyncpa [#allocation4 + $0x1], 0  ;;  %s689_s9 = smov 0   ;;  %s691_s10 = smov 0  }
   0x6   :  { %s693_s11 = smov 0   ;;  %s695_s12 = smov 0  }
   0x7   :  { %s697_s13 = smov 0   ;;  %s699_s14 = smov 0  }
   0x8 LB: > { %s423_s15 = sadd.s32 4294967295, %s667_s14   ;;  %s424_s16 = sadd.s32 4294967294, %s667_s14   ;;  %s667_s14 = sphi %s699_s14, %s21_s14   ;;  %s663_s13 = sphi %s697_s13, %s938_s13   ;;  %s659_s12 = sphi %s695_s12, %s937_s12   ;;  %s655_s11 = sphi %s693_s11, %s936_s11   ;;  %s651_s10 = sphi %s691_s10, %s935_s10   ;;  %s647_s9 = sphi %s689_s9, %s934_s9  }
   0x9   : > { %s33_s17 = sadd.s32 1, %s663_s13  ;;  %s42_s18 = sadd.s32 1, %s655_s11 }
   0xa   : > { %p35_p0 = scmp.ge.s32.totalorder %s33_s17, 8  ;;  %p49_p1 = scmp.ne.s32.totalorder %s655_s11, %s651_s10 }
   0xb   : > { %p50_p2 = scmp.eq.s32.totalorder %s667_s14, 0  ;;  %p55_p3 = scmp.ne.s32.totalorder %s651_s10, %s647_s9 }
   0xc   : > { %s940_s17 = smov (%p35_p0, %s33_s17), 0  ;;  %p56_p5 = scmp.eq.s32.totalorder %s423_s15, 0 }
   0xd   : > { %p730_p4 = por %p50_p2, %p49_p1  ;;  %s37_s20 = ssub.s32 %s663_s13, %s940_s17 }
   0xe   : > { %p107_p6 = scmp.eq.s32.totalorder %s423_s15, 7  ;;  %p40_p7 = scmp.eq.s32.totalorder %s37_s20, 0 }
   0xf   : > { %p736_p8 = por %p56_p5, %p55_p3  ;;  %p113_p10 = scmp.eq.s32.totalorder %s424_s16, 7 }
  0x10   : > { %p740_p9 = por %p107_p6, %p49_p1  ;;  %p465_p12 = scmp.lt.s32.totalorder %s667_s14, 8 }
  0x11   : > { %s923_s21 = scalar_select %p736_p8, 1, 0 }
  0x12   : > { %s924_s22 = scalar_select %p740_p9, 1, 0 }
  0x13   : > { %s745_s23 = scalar_select %p40_p7, %s655_s11, %s42_s18  }
  0x14   : > { %p747_p11 = por %p113_p10, %p55_p3  ;;  %s753_s25 = sand.u32 1, %s655_s11  }
  0x15   : > { %s427_s26 = sshll.u32 %s753_s25, 3  ;;  %s428_s27 = sshll.u32 %s663_s13, 7 }
  0x16   : > { %s925_s24 = scalar_select %p747_p11, 1, 0 }
  0x17   : > { %s762_s30 = scalar_lea.hbm %s917_s0, %s428_s27  ;;  %s137_s3 = scalar_lea.vmem [#allocation2], %s427_s26 }
  0x18   : > { %s145_s4 = sshll.u32 %s137_s3, 4  ;;  %p770_p13 = pnand %p465_p12, %p730_p4  ;;  %s766_s4 = int_to_ptr.vmem [resolvable:$true] %s145_s4 }
  0x19   : > { %s134_s6 = scalar_lea.sflag [#allocation3], %s753_s25  ;;  %s521_s7 = scalar_lea.hbm %s762_s30, 128 }
  0x1a   : > { %p522_p2 = scmp.ne.s32.totalorder %s762_s30, %s521_s7  ;;  %p523_p3 = pneg %p770_p13 }
  0x1b   : > { %s526_s16 = scalar_lea.hbm %s917_s0, 1024  ;;  %p527_p4 = scmp.lt.u32.totalorder %s762_s30, %s917_s0 }
  0x1c   : > { %p524_p5 = pnand %p523_p3, %p522_p2  ;;  %p528_p7 = scmp.lt.u32.totalorder %s526_s16, %s521_s7 }
  0x1d   : > { %p530_p12 = scmp.lt.u32.totalorder %s521_s7, %s762_s30 }
  0x1e   : > { %p525_p6 = pneg %p524_p5  ;;  %p529_p10 = por %p528_p7, %p527_p4 }
  0x20   : > { %p531_p0 = por %p530_p12, %p529_p10 }
  0x22   : > { %p532_p1 = pnand %p531_p0, %p525_p6 }
  0x24   : > { %535 = shalt.err (!%p532_p1)
}
  0x25   : > { %s536_s20 = scalar_lea.vmem %s766_s4, 128  ;;  %s669_s28 = smov [#allocation2]  }
  0x26   : > { %p537_p2 = scmp.ne.s32.totalorder %s766_s4, %s536_s20  ;;  %s541_s29 = sshll.u32 %s669_s28, 4  ;;  %s542_s29 = int_to_ptr.vmem [resolvable:$false] %s541_s29 }
  0x27   : > { %s543_s3 = scalar_lea.vmem %s542_s29, 256  ;;  %p544_p9 = scmp.lt.s32.totalorder %s766_s4, %s542_s29 }
  0x28   : > { %p539_p5 = pnand %p537_p2, %p523_p3  ;;  %p545_p4 = scmp.lt.s32.totalorder %s543_s3, %s536_s20 }
  0x2a   : > { %p540_p11 = pneg %p539_p5  ;;  %p546_p7 = por %p545_p4, %p544_p9 }
  0x2c   : > { %p547_p10 = pnand %p546_p7, %p540_p11 }
  0x2e   : > { %550 = shalt.err (!%p547_p10)
}
  0x2f   : > { %457 = dma.hbm_to_vmem [thread:$0]  (!%p770_p13), %s762_s30, 128, %s766_s4, %s134_s6  }
  0x30   : > { %p927_p0 = scmp.lt.s32.totalorder %s667_s14, 9  ;;  %p928_p1 = scmp.ge.s32.totalorder %s667_s14, 1 }
  0x31   : > { %s815_s16 = scalar_lea.hbm %s918_s1, %s428_s27  ;;  %s156_s18 = scalar_lea.vmem [#allocation5], %s427_s26 }
  0x32   : > { %p806_p6 = pnand %p928_p1, %p927_p0  ;;  %s163_s19 = sshll.u32 %s156_s18, 4  ;;  %s164_s19 = int_to_ptr.vmem [resolvable:$true] %s163_s19 }
  0x33   : > { %s153_s30 = scalar_lea.sflag [#allocation6], %s753_s25  ;;  %s551_s4 = scalar_lea.hbm %s815_s16, 128 }
  0x34   : > { %s929_s7 = scalar_select %p806_p6, 1, 0 }
  0x35   : > { %p552_p9 = scmp.ne.s32.totalorder %s815_s16, %s551_s4  ;;  %s556_s27 = scalar_lea.hbm %s918_s1, 1024 }
  0x36   : > { %p557_p2 = scmp.lt.u32.totalorder %s815_s16, %s918_s1  ;;  %p558_p5 = scmp.lt.u32.totalorder %s556_s27, %s551_s4 }
  0x37   : > { %p554_p11 = pnand %p552_p9, %p523_p3  ;;  %p560_p7 = scmp.lt.u32.totalorder %s551_s4, %s815_s16 }
  0x38   : > { %p559_p4 = por %p558_p5, %p557_p2 }
  0x39   : > { %p555_p12 = pneg %p554_p11 }
  0x3a   : > { %p561_p10 = por %p560_p7, %p559_p4 }
  0x3c   : > { %p562_p0 = pnand %p561_p10, %p555_p12 }
  0x3e   : > { %565 = shalt.err (!%p562_p0)
}
  0x3f   : > { %s566_s25 = scalar_lea.vmem %s164_s19, 128  ;;  %s670_s26 = smov [#allocation5]  }
  0x40   : > { %p567_p1 = scmp.ne.s32.totalorder %s164_s19, %s566_s25  ;;  %s571_s3 = sshll.u32 %s670_s26, 4  ;;  %s572_s3 = int_to_ptr.vmem [resolvable:$false] %s571_s3 }
  0x41   : > { %s573_s8 = scalar_lea.vmem %s572_s3, 256  ;;  %p574_p8 = scmp.lt.s32.totalorder %s164_s19, %s572_s3 }
  0x42   : > { %p569_p9 = pnand %p567_p1, %p523_p3  ;;  %p575_p6 = scmp.lt.s32.totalorder %s573_s8, %s566_s25 }
  0x44   : > { %p570_p11 = pneg %p569_p9  ;;  %p576_p2 = por %p575_p6, %p574_p8 }
  0x46   : > { %p577_p5 = pnand %p576_p2, %p570_p11 }
  0x48   : > { %580 = shalt.err (!%p577_p5)
}
  0x49   : > { %460 = dma.hbm_to_vmem [thread:$0]  (!%p770_p13), %s815_s16, 128, %s164_s19, %s153_s30  }
  0x4a   : > { %p930_p12 = scmp.ne.s32.totalorder %s929_s7, 0 }
  0x4b   : > { %s842_s15 = sand.u32 (!%p930_p12), 1, %s651_s10   ;;  %p931_p8 = scmp.ne.s32.totalorder (!%p930_p12), %s923_s21, 0 }
  0x4c   : > { %172 = sbr.rel (%p930_p12) target bundleno = 631 (0x277), region = 28  ;;  %s845_s18 = sshll.u32 (!%p930_p12), %s842_s15, 3 }
  0x4d   : > { %s175_s4 = scalar_lea.sflag (!%p930_p12), [#allocation3], %s842_s15  ;;  %s178_s6 = scalar_lea.vmem (!%p930_p12), [#allocation2], %s845_s18 }
  0x53   : > { %634 = dma.done.wait (%p931_p8), %s175_s4, 128  }
  0x54   : > { %636 = vsyncadd (%p931_p8), %s175_s4, 4294967168  ;;  %s184_s5 = scalar_lea.sflag [#allocation6], %s842_s15  ;;  %s187_s7 = scalar_lea.vmem [#allocation5], %s845_s18 }
  0x55   : > { %638 = dma.done.wait (%p931_p8), %s184_s5, 128  }
  0x56   : > { %640 = vsyncadd (%p931_p8), %s184_s5, 4294967168  ;;  %v671_v0 = vmov 0.0   ;;  %vm672_vm0 = vmmov 0   ;;  %vm216_vm1 = vcmask 64512   ;;  %v215_v1 = vld [vmem:[%s187_s7] sm:$0xff]  ;;  %v213_v2 = vld [vmem:[%s178_s6] sm:$0xff] }
  0x57   : > { %443 = vmatprep.subr.mxu0 %v671_v0  ;;  %445 = vmatprep.mubr.msk.f32.mxu0 %vm672_vm0, %v671_v0  ;;  %v214_v3 = vmul.f32 0.35355338, %v213_v2  ;;  %s438_s21 = sshll.u32 %s659_s12, 7  ;;  %s212_s16 = scalar_lea.vmem [#allocation7], %s845_s18 }
  0x58   : > { %444 = vmatpush3.xpose.msk.msra.mxu0 %vm216_vm1, %v215_v1  ;;  %s320_s19 = sshll.u32 %s212_s16, 4  ;;  %s868_s27 = scalar_lea.hbm %s919_s2, %s438_s21  ;;  %s870_s19 = int_to_ptr.vmem [resolvable:$true] %s320_s19 }
  0x59   : > { %s306_s28 = scalar_lea.sflag [#allocation4], %s842_s15  ;;  %s581_s29 = scalar_lea.vmem %s870_s19, 128 }
  0x5a   : > { %p582_p13 = scmp.ne.s32.totalorder %s870_s19, %s581_s29  ;;  %p932_p3 = scmp.ne.s32.totalorder %s924_s22, 0 }
  0x5b   : > { %446 = vmatmul.mubr.msk.f32.vlgmr.msra.gmra.mrb[0].mxu0 %vm216_vm1, %v214_v3  ;;  %s673_s12 = smov [#allocation7]  }
  0x5c   : > { %p583_p6 = pnand %p582_p13, %p932_p3  ;;  %s585_s25 = sshll.u32 %s673_s12, 4  ;;  %s586_s25 = int_to_ptr.vmem [resolvable:$false] %s585_s25 }
  0x5d   : > { %s587_s26 = scalar_lea.vmem %s586_s25, 256  ;;  %p588_p7 = scmp.lt.s32.totalorder %s870_s19, %s586_s25 }
  0x5e   : > { %p584_p4 = pneg %p583_p6  ;;  %p589_p10 = scmp.lt.s32.totalorder %s587_s26, %s581_s29 }
  0x60   : > { %p590_p0 = por %p589_p10, %p588_p7 }
  0x62   : > { %p591_p1 = pnand %p590_p0, %p584_p4 }
 0x12e   : > { %v289_v4 = vpop.f32.mrb[0].mxu0 }
 0x12f   : > { %v447_v5 = vpop.f32.mrb[1].mxu0  ;;  %v293_v6 = vsel %vm216_vm1, %v289_v4, -inf }
 0x130   : > { %294 = vmax.xlane.f32.xlu0 %v293_v6 }
 0x1bd   : > { %v295_v7 = vpop.xlane.xlu0 %294 }
 0x1be   : > { %v296_v8 = vsub.f32 %v289_v4, %v295_v7 }
 0x1c0   : > { %v297_v9 = vmul.f32 1.442695, %v296_v8 }
 0x1c2   : > { %517 = vpow2.f32 %v297_v9 }
 0x1cc   : > { %v518_v10 = vpop.eup %517 }
 0x1cd   : > { %v299_v11 = vsel %vm216_vm1, %v518_v10, 0.0 }
 0x1ce   : > { %300 = vadd.xlane.f32.xlu0 %v299_v11 }
 0x25b   : > { %v301_v12 = vpop.xlane.xlu0 %300 }
 0x25c   : > { %519 = vrcp.f32 %v301_v12 }
 0x266   : > { %v520_v13 = vpop.eup %519 }
 0x267   : > { %v303_v14 = vmul.f32 %v520_v13, %v518_v10 }
 0x269   : > { %304 = vst.msk [vmem:[%s212_s16] sm:$0xff] %vm216_vm1, %v303_v14 }
 0x26a   : > { %594 = shalt.err (!%p591_p1)
}
 0x26b   : > { %s595_s3 = scalar_lea.hbm %s868_s27, 128  ;;  %s599_s18 = scalar_lea.hbm %s919_s2, 1024 }
 0x26c   : > { %p596_p9 = scmp.ne.s32.totalorder %s868_s27, %s595_s3  ;;  %p600_p5 = scmp.lt.u32.totalorder %s868_s27, %s919_s2 }
 0x26d   : > { %p601_p12 = scmp.lt.u32.totalorder %s599_s18, %s595_s3  ;;  %p603_p13 = scmp.lt.u32.totalorder %s595_s3, %s868_s27 }
 0x26e   : > { %p597_p11 = pnand %p596_p9, %p932_p3 }
 0x26f   : > { %p602_p8 = por %p601_p12, %p600_p5 }
 0x270   : > { %p598_p2 = pneg %p597_p11 }
 0x271   : > { %p604_p6 = por %p603_p13, %p602_p8 }
 0x273   : > { %p605_p4 = pnand %p604_p6, %p598_p2 }
 0x275   : > { %608 = shalt.err (!%p605_p4)
}
 0x276   : > { %452 = dma.vmem_to_hbm [thread:$0]  (%p932_p3), %s870_s19, 128, %s868_s27, %s306_s28  }
 0x277 PF: > { %p466_p7 = scmp.ge.s32.totalorder %s667_s14, 2  ;;  %s332_s5 = sand.u32 1, %s647_s9  }
 0x278   : > { %p933_p10 = scmp.ne.s32.totalorder %s925_s24, 0  ;;  %s333_s7 = scalar_lea.sflag [#allocation4], %s332_s5 }
 0x27a   : > { %p462_p0 = pnand %p466_p7, %p933_p10 }
 0x27c   : > { %642 = dma.done.wait (!%p462_p0), %s333_s7, 128  }
 0x27d   : > { %644 = vsyncadd (!%p462_p0), %s333_s7, 4294967168  ;;  %s21_s14 = sadd.s32 1, %s667_s14   ;;  %s934_s9 = smov %s651_s10 }
 0x27e   : > { %p18_p1 = scmp.ge.s32.totalorder %s21_s14, 10   ;;  %s935_s10 = smov %s655_s11 }
 0x27f   : > { %s936_s11 = smov %s745_s23  ;;  %s937_s12 = smov %s663_s13 }
 0x280   : > { %s938_s13 = smov %s940_s17  ;;  %20 = sbr.rel (!%p18_p1) target bundleno = 8 (0x8), region = 86 }
 0x287   :  { %338 = vsyncpa [#allocation3], 1 }
 0x288   :  { %340 = vsyncpa [#allocation3 + $0x1], 1 }
 0x289   :  { %341 = vsyncpa [#allocation6], 1 }
 0x28a   :  { %343 = vsyncpa [#allocation6 + $0x1], 1 }
 0x28b   :  { %344 = vsyncpa [#allocation4], 1 }
 0x28c   :  { %346 = vsyncpa [#allocation4 + $0x1], 1 }

</bundles_post_ra>
